<compile_context>
chip_gen: v6e
topology: v6e:2x2x1
jax: 0.10.0
libtpu: 0.0.40
codegen_flags: <defaults>
</compile_context>

<pallas_src>
import jax
import jax.numpy as jnp
from jax.experimental import pallas as pl
from jax.experimental.pallas import tpu as pltpu

_MAX_DMA_CHUNKS = 8               # concurrent DMA streams for large arrays
_MIN_CHUNK_BYTES = 1 << 20        # don't split below ~1 MiB per DMA
_SMALL_BYPASS_BYTES = 256 << 10   # below this the public wrapper is a pure no-op


def _make_identity_kernel(chunks):
    """Build a kernel body that DMA-copies x_hbm -> o_hbm.

    `chunks` is a static tuple of (start, size) slices along axis 0; an empty
    tuple means "one DMA for the whole array".
    """
    n = len(chunks)

    def kernel(x_hbm, o_hbm):
        if n == 0:
            def body(sem):
                cp = pltpu.make_async_copy(x_hbm, o_hbm, sem)
                cp.start()
                cp.wait()

            pl.run_scoped(body, pltpu.SemaphoreType.DMA)
        else:
            def body(sem):
                cps = [
                    pltpu.make_async_copy(
                        x_hbm.at[pl.ds(start, size)],
                        o_hbm.at[pl.ds(start, size)],
                        sem.at[i],
                    )
                    for i, (start, size) in enumerate(chunks)
                ]
                # Kick off all DMAs first so the queues run concurrently,
                # then wait for all of them.
                for cp in cps:
                    cp.start()
                for cp in cps:
                    cp.wait()

            pl.run_scoped(body, pltpu.SemaphoreType.DMA((n,)))

    return kernel


def _chunk_plan(shape, itemsize):
    """Static (start, size) slices along axis 0 for concurrent DMAs."""
    if len(shape) == 0:
        return ()
    leading = shape[0]
    total_bytes = itemsize
    for d in shape:
        total_bytes *= d
    n = int(max(1, min(leading, _MAX_DMA_CHUNKS, total_bytes // _MIN_CHUNK_BYTES)))
    if n <= 1:
        return ()
    bounds = [(i * leading) // n for i in range(n + 1)]
    return tuple(
        (bounds[i], bounds[i + 1] - bounds[i])
        for i in range(n)
        if bounds[i + 1] > bounds[i]
    )


def _identity_copy_pallas(x):
    """Pallas HBM->HBM DMA copy of `x` (used when a fresh buffer is wanted)."""
    itemsize = jnp.dtype(x.dtype).itemsize
    chunks = _chunk_plan(x.shape, itemsize)
    return pl.pallas_call(
        _make_identity_kernel(chunks),
        out_shape=jax.ShapeDtypeStruct(x.shape, x.dtype),
        in_specs=[pl.BlockSpec(memory_space=pl.ANY)],
        out_specs=pl.BlockSpec(memory_space=pl.ANY),
        cost_estimate=pl.CostEstimate(
            flops=0,
            transcendentals=0,
            bytes_accessed=2 * x.size * itemsize,
        ),
    )(x)


def _forward_impl(x):
    """Pallas equivalent of _NewModuleBetaForTest.forward: returns x unchanged."""
    itemsize = jnp.dtype(x.dtype).itemsize
    if x.size == 0 or x.ndim == 0 or x.size * itemsize < _SMALL_BYPASS_BYTES:
        # Pure identity: nothing to compute, nothing worth a kernel launch.
        return x
    return _identity_copy_pallas(x)


# Public forward (module semantics for all sizes).
new_module_beta_forward = jax.jit(_forward_impl)

# Kernel-backed path (always runs the Pallas DMA copy); used by the demo below.
identity_copy = jax.jit(_identity_copy_pallas)


if __name__ == "__main__":
    key = jax.random.PRNGKey(0)
    # Small NCHW input consistent with a generic module forward.
    x = jax.random.normal(key, (2, 4, 16, 16), dtype=jnp.float32)

    # Run the Pallas kernel once and block on the result.
    y = jax.block_until_ready(identity_copy(x))
    assert y.shape == x.shape
    assert y.dtype == x.dtype
    assert bool(jnp.all(y == x))

    # Public forward keeps the torch-module semantics (tiny inputs short-circuit).
    y2 = jax.block_until_ready(new_module_beta_forward(x))
    assert y2.shape == x.shape and y2.dtype == x.dtype
    assert bool(jnp.all(y2 == x))

    print("KERNEL_OK")
</pallas_src>

<mosaic_0001>
module attributes {stable_mosaic.version = 11 : i64} {
  func.func @kernel(%arg0: memref<2x4x16x16xf32, #tpu.memory_space<any>>, %arg1: memref<2x4x16x16xf32, #tpu.memory_space<any>>) attributes {dimension_semantics = [], scalar_prefetch = 0 : i64, scratch_operands = 0 : i64, tpu.core_type = #tpu.core_type<tc>} {
    "tpu.region"() ({
      %0 = tpu.sem_alloc : memref<!tpu.dma_semaphore, #tpu.memory_space<semaphore_mem>>
      tpu.enqueue_dma source(%arg0 : memref<2x4x16x16xf32, #tpu.memory_space<any>>) target(%arg1 : memref<2x4x16x16xf32, #tpu.memory_space<any>>) target_semaphore(%0 : memref<!tpu.dma_semaphore, #tpu.memory_space<semaphore_mem>>)
      tpu.wait_dma2 semaphore(%0 : memref<!tpu.dma_semaphore, #tpu.memory_space<semaphore_mem>>) src(%arg0 : memref<2x4x16x16xf32, #tpu.memory_space<any>>) dst(%arg1 : memref<2x4x16x16xf32, #tpu.memory_space<any>>)
      tpu.yield
    }) : () -> ()
    return
  }
}

</mosaic_0001>

<bundles_post_ra>
// kernel: _identity_copy_pallas.1
= control target key start
LH: loop header
LB: loop body
LE: loop exit
PB: predicated region body
PF: predicated region fallthrough
CT: control target
= control target key end

     0   :  { %s23_s6 = smov [#allocation2]   ;;  %s24_s7 = smov 131072   ;;  %s42_s0 = inlined_call_operand.hbm [shape: f32[2,4,16,16], index: 0, kind: input, shape index: {}]   ;;  %s43_s1 = inlined_call_operand.hbm [shape: f32[2,4,16,16], index: 1, kind: output, shape index: {}]  }
   0x1   :  { %s25_s8 = smov 0  }
   0x2   :  { %12 = dma.general %s42_s0, 2048, %s43_s1, %s23_s6, %s24_s7, [#allocation4], %s25_s8, 0  }
   0x3   :  { %21 = dma.done.wait [#allocation2], 2048 }
   0x4   :  { %22 = vsyncadd [#allocation2], 4294965248 }

</bundles_post_ra>
